<compile_context>
chip_gen: v7x
topology: tpu7x:2x2x1
jax: 0.10.0
libtpu: 0.0.40
codegen_flags: <defaults>
</compile_context>

<pallas_src>
import jax
import jax.numpy as jnp
from jax.experimental import pallas as pl
from jax.experimental.pallas import tpu as pltpu


def _dlinear_kernel(w_ref, b_ref, x_ref, o_ref):
    """One batch tile.

    x_ref: (L, T) VMEM  -- features on sublanes, batch on lanes (lane-dense)
    w_ref: (O, L) SMEM  -- weight scalars
    b_ref: (O,)   SMEM  -- bias scalars
    o_ref: (O, T) VMEM  -- lane-dense output
    """
    x = x_ref[...].astype(jnp.float32)   # no-op for f32; upcast for bf16 inputs
    L = x.shape[0]
    O = o_ref.shape[0]
    for o in range(O):                   # O is tiny and static (1 here)
        # Unrolled scalar * vector FMA chain on the VPU (no MXU push/pop).
        acc = w_ref[o, 0] * x[0:1, :]
        for l in range(1, L):
            acc = acc + w_ref[o, l] * x[l:l + 1, :]
        o_ref[o:o + 1, :] = (acc + b_ref[o]).astype(o_ref.dtype)


def dlinear_forward_time_major(x_lb, weight, bias, *, block_lanes=None):
    """Fast path.

    x_lb:   (L, B) feature-major input (f32 or bf16), batch on the lane axis.
    weight: (O, L) f32 (PyTorch nn.Linear layout), bias: (O,) f32.
    Returns (B, O) f32.
    """
    L, B = x_lb.shape
    O, L_w = weight.shape
    assert L_w == L and bias.shape == (O,)

    if block_lanes is None:
        if B <= 128:
            block_lanes = B          # single block; 'equal to full dim' rule
        else:
            # Large lane-aligned tile: double-buffered in+out f32 tiles cost
            # ~2*(L+O)*4*T bytes (~5 MiB at T=128K), safely inside the v7x
            # 32 MiB scoped-VMEM default as well as v5e/v6e VMEM.
            block_lanes = min(pl.cdiv(B, 128) * 128, 128 * 1024)

    grid = (pl.cdiv(B, block_lanes),)

    y_ob = pl.pallas_call(
        _dlinear_kernel,
        out_shape=jax.ShapeDtypeStruct((O, B), jnp.float32),
        grid=grid,
        in_specs=[
            pl.BlockSpec(memory_space=pltpu.MemorySpace.SMEM),   # weight scalars
            pl.BlockSpec(memory_space=pltpu.MemorySpace.SMEM),   # bias scalar(s)
            pl.BlockSpec((L, block_lanes), lambda i: (0, i)),    # x batch tile
        ],
        out_specs=pl.BlockSpec((O, block_lanes), lambda i: (0, i)),
        compiler_params=pltpu.CompilerParams(
            dimension_semantics=("parallel",),   # shards batch across TCs on v7x
        ),
    )(weight, bias, x_lb)

    # (O, B) -> (B, O); for O == 1 this is a free reshape (no HBM pass).
    return y_ob.T


def dlinear_forward(x_bl, weight, bias, **kwargs):
    """Drop-in module semantics: x (B, L) -> (B, O).

    NOTE: the transpose below costs one extra HBM pass over x; prefer emitting
    the feature-major (L, B) layout upstream and calling
    dlinear_forward_time_major directly.
    """
    return dlinear_forward_time_major(jnp.transpose(x_bl), weight, bias, **kwargs)


if __name__ == "__main__":
    WINDOW = 4       # input_len
    OUTPUT_DIM = 1
    BATCH = 256      # small demo batch (2 lane tiles of 128 -> exercises the grid)

    key = jax.random.PRNGKey(0)
    kx, kw, kb = jax.random.split(key, 3)

    # Deterministic init mimicking nn.Linear's uniform(-1/sqrt(L), 1/sqrt(L)).
    bound = 1.0 / (WINDOW ** 0.5)
    weight = jax.random.uniform(kw, (OUTPUT_DIM, WINDOW), jnp.float32, -bound, bound)
    bias = jax.random.uniform(kb, (OUTPUT_DIM,), jnp.float32, -bound, bound)

    x_bl = jax.random.normal(kx, (BATCH, WINDOW), jnp.float32)   # module-natural layout
    x_lb = jnp.asarray(x_bl.T)                                   # producer-side feature-major layout

    # Fast path: feature-major input, 2 grid steps of 128 lanes.
    y = dlinear_forward_time_major(x_lb, weight, bias, block_lanes=128)
    jax.block_until_ready(y)

    # Module-compatible wrapper (same semantics as the PyTorch forward).
    y_compat = dlinear_forward(x_bl, weight, bias)
    jax.block_until_ready(y_compat)

    # Reference: x @ W.T + b (PyTorch nn.Linear forward).
    y_ref = x_bl @ weight.T + bias
    assert y.shape == (BATCH, OUTPUT_DIM)
    assert jnp.allclose(y, y_ref, atol=1e-5, rtol=1e-5)
    assert jnp.allclose(y_compat, y_ref, atol=1e-5, rtol=1e-5)

    print("KERNEL_OK")
</pallas_src>

<mosaic_0001>
module attributes {stable_mosaic.version = 11 : i64} {
  func.func @_dlinear_kernel(%arg0: i32, %arg1: memref<1x4xf32, #tpu.memory_space<smem>>, %arg2: memref<1xf32, #tpu.memory_space<smem>>, %arg3: memref<4x128xf32, #tpu.memory_space<vmem>>, %arg4: memref<1x128xf32, #tpu.memory_space<vmem>>) attributes {dimension_semantics = [#tpu.dimension_semantics<parallel>], iteration_bounds = array<i64: 2>, scalar_prefetch = 0 : i64, scratch_operands = 0 : i64, tpu.core_type = #tpu.core_type<tc>, window_params = [{transform_indices = @transform_0, window_bounds = array<i64: 1, 4>}, {transform_indices = @transform_1, window_bounds = array<i64: 1>}, {transform_indices = @transform_2, window_bounds = array<i64: 4, 128>}, {transform_indices = @transform_3, window_bounds = array<i64: 1, 128>}]} {
    %c0 = arith.constant 0 : index
    %c0_0 = arith.constant 0 : index
    %0 = vector.load %arg3[%c0, %c0_0] : memref<4x128xf32, #tpu.memory_space<vmem>>, vector<4x128xf32>
    %c0_1 = arith.constant 0 : index
    %c0_2 = arith.constant 0 : index
    %1 = memref.load %arg1[%c0_1, %c0_2] : memref<1x4xf32, #tpu.memory_space<smem>>
    %2 = vector.extract_strided_slice %0 {offsets = [0, 0], sizes = [1, 128], strides = [1, 1]} : vector<4x128xf32> to vector<1x128xf32>
    %3 = vector.broadcast %1 : f32 to vector<1x128xf32>
    %4 = arith.mulf %3, %2 : vector<1x128xf32>
    %c0_3 = arith.constant 0 : index
    %c1 = arith.constant 1 : index
    %5 = memref.load %arg1[%c0_3, %c1] : memref<1x4xf32, #tpu.memory_space<smem>>
    %6 = vector.extract_strided_slice %0 {offsets = [1, 0], sizes = [1, 128], strides = [1, 1]} : vector<4x128xf32> to vector<1x128xf32>
    %7 = vector.broadcast %5 : f32 to vector<1x128xf32>
    %8 = arith.mulf %7, %6 : vector<1x128xf32>
    %9 = arith.addf %4, %8 : vector<1x128xf32>
    %c0_4 = arith.constant 0 : index
    %c2 = arith.constant 2 : index
    %10 = memref.load %arg1[%c0_4, %c2] : memref<1x4xf32, #tpu.memory_space<smem>>
    %11 = vector.extract_strided_slice %0 {offsets = [2, 0], sizes = [1, 128], strides = [1, 1]} : vector<4x128xf32> to vector<1x128xf32>
    %12 = vector.broadcast %10 : f32 to vector<1x128xf32>
    %13 = arith.mulf %12, %11 : vector<1x128xf32>
    %14 = arith.addf %9, %13 : vector<1x128xf32>
    %c0_5 = arith.constant 0 : index
    %c3 = arith.constant 3 : index
    %15 = memref.load %arg1[%c0_5, %c3] : memref<1x4xf32, #tpu.memory_space<smem>>
    %16 = vector.extract_strided_slice %0 {offsets = [3, 0], sizes = [1, 128], strides = [1, 1]} : vector<4x128xf32> to vector<1x128xf32>
    %17 = vector.broadcast %15 : f32 to vector<1x128xf32>
    %18 = arith.mulf %17, %16 : vector<1x128xf32>
    %19 = arith.addf %14, %18 : vector<1x128xf32>
    %c0_6 = arith.constant 0 : index
    %20 = memref.load %arg2[%c0_6] : memref<1xf32, #tpu.memory_space<smem>>
    %21 = vector.broadcast %20 : f32 to vector<1x128xf32>
    %22 = arith.addf %19, %21 : vector<1x128xf32>
    %c0_7 = arith.constant 0 : index
    %c0_8 = arith.constant 0 : index
    %23 = vector.load %arg4[%c0_7, %c0_8] : memref<1x128xf32, #tpu.memory_space<vmem>>, vector<1x128xf32>
    tpu.vector_store %arg4[%c0_7, %c0_8], %22 {strides = array<i32>} : memref<1x128xf32, #tpu.memory_space<vmem>>, vector<1x128xf32>,
    return
  }
  func.func @transform_0(%arg0: i32) -> (i32, i32) {
    %c0_i32 = arith.constant 0 : i32
    %c0_i32_0 = arith.constant 0 : i32
    %c0_i32_1 = arith.constant 0 : i32
    return %c0_i32, %c0_i32_0 : i32, i32
  }
  func.func @transform_1(%arg0: i32) -> i32 {
    %c0_i32 = arith.constant 0 : i32
    %c0_i32_0 = arith.constant 0 : i32
    return %c0_i32 : i32
  }
  func.func @transform_2(%arg0: i32) -> (i32, i32) {
    %c0_i32 = arith.constant 0 : i32
    %c0_i32_0 = arith.constant 0 : i32
    return %c0_i32, %arg0 : i32, i32
  }
  func.func @transform_3(%arg0: i32) -> (i32, i32) {
    %c0_i32 = arith.constant 0 : i32
    %c0_i32_0 = arith.constant 0 : i32
    return %c0_i32, %arg0 : i32, i32
  }
}

</mosaic_0001>

<bundles_post_ra>
// kernel: tpu_custom_call.1
= control target key start
LH: loop header
LB: loop body
LE: loop exit
PB: predicated region body
PF: predicated region fallthrough
CT: control target
= control target key end

     0   :  { %s728_s0 = inlined_call_operand.vmem [shape: f32[1,4], index: 0, kind: input, shape index: {}]   ;;  %s729_s1 = inlined_call_operand.<no memory space> [shape: f32[1], index: 1, kind: input, shape index: {}]   ;;  %s730_s2 = inlined_call_operand.hbm [shape: f32[4,256], index: 2, kind: input, shape index: {}]   ;;  %s731_s3 = inlined_call_operand.hbm [shape: f32[1,256], index: 3, kind: output, shape index: {}]  }
   0x1   :  { %8 = sst [smem:[#allocation2]] %s729_s1 }
   0x2   :  { %9 = vsyncpa [#allocation6], 0 }
   0x3   :  { %10 = vsyncpa [#allocation4], 0 }
   0x4   :  { %12 = vsyncpa [#allocation4 + $0x1], 0 }
   0x5   :  { %13 = vsyncpa [#allocation5], 0 }
   0x6   :  { %15 = vsyncpa [#allocation5 + $0x1], 0  ;;  %s535_s14 = smov 0   ;;  %s537_s15 = smov 0  }
   0x7   :  { %s539_s16 = smov 0   ;;  %s541_s17 = smov 0  }
   0x8 LB: > { %s556_s1 = sadd.s32 4294967295, %s507_s17   ;;  %s320_s18 = sadd.s32 4294967294, %s507_s17   ;;  %s507_s17 = sphi %s541_s17, %s752_s17   ;;  %s503_s16 = sphi %s539_s16, %s751_s16   ;;  %s499_s15 = sphi %s537_s15, %s750_s15   ;;  %s495_s14 = sphi %s535_s14, %s749_s14  }
   0x9   : > { %p83_p0 = scmp.ne.s32.totalorder %s499_s15, %s495_s14  ;;  %p732_p1 = scmp.eq.s32.totalorder %s556_s1, 0 }
   0xa   : > { %p113_p3 = scmp.eq.s32.totalorder %s320_s18, 1  ;;  %p321_p5 = scmp.ge.s32.totalorder %s507_s17, 1 }
   0xb   : > { %p565_p4 = por %p732_p1, %p83_p0  ;;  %p120_p7 = scmp.lt.s32.totalorder %s507_s17, 3 }
   0xc   : > { %p570_p6 = por %p113_p3, %p83_p0  ;;  %s133_s23 = sshll.u32 %s728_s0, 4  ;;  %s134_s23 = int_to_ptr.vmem [resolvable:$true] %s133_s23 }
   0xd   : > { %s735_s19 = scalar_select %p565_p4, 1, 0 }
   0xe   : > { %s736_s20 = scalar_select %p570_p6, 1, 0 }
   0xf   : > { %p578_p8 = pnand %p321_p5, %p120_p7  ;;  %s586_s25 = sadd.s32 1, %s507_s17  }
  0x10   : > { %s67_s27 = ssub.s32 %s507_s17, %s586_s25  ;;  %s70_s29 = sadd.s32 1, %s503_s16 }
  0x11   : > { %p343_p10 = pneg %p578_p8  ;;  %p596_p12 = scmp.eq.s32.totalorder %s67_s27, 0 }
  0x12   : > { %p77_p13 = scmp.ne.s32.totalorder %s503_s16, %s499_s15  ;;  %s392_s30 = scalar_lea.vmem %s134_s23, 16 }
  0x13   : > { %p590_p11 = pnand %p343_p10, %p732_p1  ;;  %p393_p0 = scmp.ne.s32.totalorder %s134_s23, %s392_s30 }
  0x14   : > { %p400_p9 = scmp.lt.s32.totalorder %s134_s23, %s134_s23  ;;  %p401_p2 = scmp.lt.s32.totalorder %s392_s30, %s392_s30 }
  0x15   : > { %p394_p3 = pneg %p590_p11 }
  0x16   : > { %p402_p10 = por %p401_p2, %p400_p9 }
  0x17   : > { %p395_p5 = pnand %p394_p3, %p393_p0 }
  0x19   : > { %p396_p7 = pneg %p395_p5 }
  0x1b   : > { %p403_p1 = pnand %p402_p10, %p396_p7 }
  0x1d   : > { %406 = shalt.err (!%p403_p1)
}
  0x1e   : > { %s509_s4 = smov [#allocation3]   ;;  %p78_p2 = scmp.eq.s32.totalorder %s507_s17, 0 }
  0x1f   : > { %346 = dma.vmem_to_smem (!%p590_p11), %s134_s23, 16, %s509_s4, [#allocation6]  }
  0x20   : > { %s610_s5 = scalar_select %p596_p12, %s503_s16, %s70_s29  }
  0x21   : > { %p740_p1 = scmp.eq.s32.totalorder %s556_s1, 1  ;;  %p356_p0 = scmp.lt.s32.totalorder %s507_s17, 2 }
  0x22   : > { %s147_s7 = sand.u32 1, %s503_s16   ;;  %p79_p3 = por %p78_p2, %p77_p13 }
  0x23   : > { %p618_p9 = por %p740_p1, %p77_p13  ;;  %s324_s8 = sshll.u32 %s147_s7, 2 }
  0x24   : > { %s325_s9 = sshll.u32 %s507_s17, 6  ;;  %s151_s13 = scalar_lea.vmem [#allocation7], %s324_s8 }
  0x25   : > { %s741_s6 = scalar_select %p618_p9, 1, 0 }
  0x26   : > { %s631_s12 = scalar_lea.hbm %s730_s2, %s325_s9  ;;  %s158_s18 = sshll.u32 %s151_s13, 4  ;;  %s637_s18 = int_to_ptr.vmem [resolvable:$true] %s158_s18 }
  0x27   : > { %p633_p11 = pnand %p356_p0, %p79_p3  ;;  %s148_s22 = scalar_lea.sflag [#allocation4], %s147_s7 }
  0x28   : > { %s407_s23 = scalar_lea.hbm %s631_s12, 64  ;;  %s412_s28 = scalar_lea.hbm %s730_s2, 128 }
  0x29   : > { %p408_p12 = scmp.ne.s32.totalorder %s631_s12, %s407_s23  ;;  %p409_p13 = pneg %p633_p11 }
  0x2a   : > { %p413_p10 = scmp.lt.u32.totalorder %s631_s12, %s730_s2  ;;  %p414_p2 = scmp.lt.u32.totalorder %s412_s28, %s407_s23 }
  0x2b   : > { %p410_p5 = pnand %p409_p13, %p408_p12  ;;  %p416_p0 = scmp.lt.u32.totalorder %s407_s23, %s631_s12 }
  0x2c   : > { %p415_p1 = por %p414_p2, %p413_p10 }
  0x2d   : > { %p411_p7 = pneg %p410_p5 }
  0x2e   : > { %p417_p3 = por %p416_p0, %p415_p1 }
  0x30   : > { %p418_p6 = pnand %p417_p3, %p411_p7 }
  0x32   : > { %421 = shalt.err (!%p418_p6)
}
  0x33   : > { %s422_s4 = scalar_lea.vmem %s637_s18, 64  ;;  %s510_s7 = smov [#allocation7]  }
  0x34   : > { %p423_p12 = scmp.ne.s32.totalorder %s637_s18, %s422_s4  ;;  %s427_s8 = sshll.u32 %s510_s7, 4  ;;  %s428_s8 = int_to_ptr.vmem [resolvable:$false] %s427_s8 }
  0x35   : > { %s429_s9 = scalar_lea.vmem %s428_s8, 128  ;;  %p430_p4 = scmp.lt.s32.totalorder %s637_s18, %s428_s8 }
  0x36   : > { %p425_p5 = pnand %p423_p12, %p409_p13  ;;  %p431_p10 = scmp.lt.s32.totalorder %s429_s9, %s422_s4 }
  0x38   : > { %p426_p9 = pneg %p425_p5  ;;  %p432_p2 = por %p431_p10, %p430_p4 }
  0x3a   : > { %p433_p1 = pnand %p432_p2, %p426_p9 }
  0x3c   : > { %436 = shalt.err (!%p433_p1)
}
  0x3d   : > { %350 = dma.hbm_to_vmem [thread:$0]  (!%p633_p11), %s631_s12, 64, %s637_s18, %s148_s22  }
  0x3e   : > { %167 = sbr.rel (%p578_p8) target bundleno = 109 (0x6d), region = 32  ;;  %p743_p6 = scmp.eq.s32.totalorder (!%p578_p8), %s556_s1, 0 }
  0x45   : > { %482 = dma.done.wait (%p743_p6), [#allocation6], 16   ;;  %p744_p13 = pmov %p743_p6 }
  0x46   : > { %s671_s10 = sand.u32 1, %s499_s15   ;;  %p745_p4 = scmp.ne.s32.totalorder %s735_s19, 0 }
  0x47   : > { %484 = vsyncadd (%p744_p13), [#allocation6], 4294967280  ;;  %s328_s11 = sshll.u32 %s671_s10, 2  ;;  %s174_s13 = scalar_lea.sflag [#allocation4], %s671_s10 }
  0x48   : > { %s177_s21 = scalar_lea.vmem [#allocation7], %s328_s11 }
  0x49   : > { %486 = dma.done.wait (%p745_p4), %s174_s13, 64  }
  0x4a   : > { %488 = vsyncadd (%p745_p4), %s174_s13, 4294967232 }
  0x4b   : > { %182 = sfence }
  0x4c   : > { %s201_s24 = sld [smem:[#allocation3]]  ;;  %s329_s12 = sld [smem:[#allocation3 + $0x1]]  ;;  %v200_v0 = vld [vmem:[%s177_s21] sm:$0xf] }
  0x4d   : > { %s330_s18 = sld [smem:[#allocation3 + $0x2]]  ;;  %s331_s22 = sld [smem:[#allocation3 + $0x3]] }
  0x4e   : > { %s225_s23 = sld [smem:[#allocation2]]  ;;  %s199_s19 = scalar_lea.vmem [#allocation8], %s671_s10 }
  0x4f   : > { %s242_s26 = sshll.u32 %s199_s19, 4  ;;  %s332_s27 = sshll.u32 %s556_s1, 4  ;;  %s681_s26 = int_to_ptr.vmem [resolvable:$true] %s242_s26 }
  0x50   : > { %s686_s30 = scalar_lea.hbm %s731_s3, %s332_s27  ;;  %s230_s4 = scalar_lea.sflag [#allocation5], %s671_s10 }
  0x51   : > { %s437_s7 = scalar_lea.vmem %s681_s26, 16  ;;  %p746_p9 = scmp.ne.s32.totalorder %s741_s6, 0 }
  0x52   : > { %v202_v1 = vstv %s201_s24  ;;  %v205_v2 = vstv %s329_s12  ;;  %p438_p8 = scmp.ne.s32.totalorder %s681_s26, %s437_s7  ;;  %s511_s1 = smov [#allocation8]  }
  0x53   : > { %v212_v3 = vstv %s330_s18  ;;  %v203_v4 = vmul.f32 %v202_v1, %v200_v0  ;;  %v206_v5 = vmul.f32 %v205_v2, %v200_v0  ;;  %v219_v7 = vstv %s331_s22  ;;  %s441_s8 = sshll.u32 %s511_s1, 4  ;;  %s442_s8 = int_to_ptr.vmem [resolvable:$false] %s441_s8 }
  0x54   : > { %v213_v6 = vmul.f32 %v212_v3, %v200_v0  ;;  %v220_v8 = vmul.f32 %v219_v7, %v200_v0  ;;  %v226_v14 = vstv %s225_s23  ;;  %p439_p11 = pnand %p438_p8, %p746_p9  ;;  %s443_s9 = scalar_lea.vmem %s442_s8, 32 }
  0x55   : > { %v208_v9 = vrot.slane %v206_v5, 1  ;;  %p444_p0 = scmp.lt.s32.totalorder %s681_s26, %s442_s8  ;;  %p445_p3 = scmp.lt.s32.totalorder %s443_s9, %s437_s7 }
  0x56   : > { %v215_v10 = vrot.slane %v213_v6, 2  ;;  %v222_v12 = vrot.slane %v220_v8, 3  ;;  %p440_p7 = pneg %p439_p11 }
  0x57   : > { %v210_v11 = vadd.f32 %v208_v9, %v203_v4  ;;  %p446_p12 = por %p445_p3, %p444_p0 }
  0x59   : > { %v217_v13 = vadd.f32 %v215_v10, %v210_v11  ;;  %p447_p5 = pnand %p446_p12, %p440_p7 }
  0x5b   : > { %v224_v15 = vadd.f32 %v222_v12, %v217_v13 }
  0x5d   : > { %v227_v16 = vadd.f32 %v226_v14, %v224_v15 }
  0x5f   : > { %228 = vst [vmem:[%s199_s19] sm:$0x1] %v227_v16 }
  0x60   : > { %450 = shalt.err (!%p447_p5)
}
  0x61   : > { %s451_s10 = scalar_lea.hbm %s686_s30, 16  ;;  %s455_s21 = scalar_lea.hbm %s731_s3, 32 }
  0x62   : > { %p452_p10 = scmp.ne.s32.totalorder %s686_s30, %s451_s10  ;;  %p456_p6 = scmp.lt.u32.totalorder %s686_s30, %s731_s3 }
  0x63   : > { %p457_p13 = scmp.lt.u32.totalorder %s455_s21, %s451_s10  ;;  %p459_p8 = scmp.lt.u32.totalorder %s451_s10, %s686_s30 }
  0x64   : > { %p453_p2 = pnand %p452_p10, %p746_p9 }
  0x65   : > { %p458_p4 = por %p457_p13, %p456_p6 }
  0x66   : > { %p454_p1 = pneg %p453_p2 }
  0x67   : > { %p460_p11 = por %p459_p8, %p458_p4 }
  0x69   : > { %p461_p7 = pnand %p460_p11, %p454_p1 }
  0x6b   : > { %464 = shalt.err (!%p461_p7)
}
  0x6c   : > { %341 = dma.vmem_to_hbm [thread:$0]  (%p746_p9), %s681_s26, 16, %s686_s30, %s230_s4  }
  0x6d PF: > { %s254_s18 = sand.u32 1, %s495_s14   ;;  %p747_p0 = scmp.ne.s32.totalorder %s736_s20, 0 }
  0x6e   : > { %p748_p3 = scmp.ge.s32.totalorder %s507_s17, 2  ;;  %s255_s22 = scalar_lea.sflag [#allocation5], %s254_s18 }
  0x70   : > { %p352_p12 = pnand %p748_p3, %p747_p0 }
  0x72   : > { %490 = dma.done.wait (!%p352_p12), %s255_s22, 16  }
  0x73   : > { %492 = vsyncadd (!%p352_p12), %s255_s22, 4294967280  ;;  %p18_p5 = scmp.ge.s32.totalorder %s586_s25, 4   ;;  %s749_s14 = smov %s499_s15 }
  0x74   : > { %s750_s15 = smov %s503_s16  ;;  %s751_s16 = smov %s610_s5 }
  0x75   : > { %s752_s17 = smov %s586_s25  ;;  %20 = sbr.rel (!%p18_p5) target bundleno = 8 (0x8), region = 82 }
  0x7c   :  { %259 = vsyncpa [#allocation4], 1 }
  0x7d   :  { %261 = vsyncpa [#allocation4 + $0x1], 1 }
  0x7e   :  { %262 = vsyncpa [#allocation5], 1 }
  0x7f   :  { %264 = vsyncpa [#allocation5 + $0x1], 1 }
  0x80   :  { %265 = vsyncpa [#allocation6], 1 }
  0x81   :  { %267 = vsyncpa [#allocation6 + $0x1], 1 }

</bundles_post_ra>
